<compile_context>
chip_gen: v6e
topology: v6e:2x2x1
jax: 0.10.0
libtpu: 0.0.40
codegen_flags: <defaults>
</compile_context>

<pallas_src>
import jax
import jax.numpy as jnp
from jax.experimental import pallas as pl
from jax.experimental.pallas import tpu as pltpu


# ---------------------------------------------------------------------------
# Kernel: the "lam" computation, elementwise x * 2 + 1 on the VPU.
# Any other elementwise lam could be dropped into this body unchanged.
# Python-int constants are weakly typed -> result keeps x_ref's dtype.
# ---------------------------------------------------------------------------
def _lambda_kernel(x_ref, o_ref):
    o_ref[...] = x_ref[...] * 2 + 1


# Tuning knobs ---------------------------------------------------------------
_SINGLE_BLOCK_MAX_BYTES = 512 * 1024        # below this: one block, no grid
_TARGET_BLOCK_BYTES = 8 * 1024 * 1024       # ~8 MiB blocks (v7x step-overhead)
_VMEM_LIMIT_BYTES = 40 * 1024 * 1024        # 2x(in+out) 8 MiB buffers + slack
_LANE_CANDIDATES = (4096, 2048, 1024, 512, 256, 128)   # lane-dense last dims


def _cost(n, itemsize):
    # Memory-bound elementwise op: 2 flops/elem, read + write.
    return pl.CostEstimate(flops=2 * n, transcendentals=0,
                           bytes_accessed=2 * n * itemsize)


def _min_rows(itemsize):
    # Native sublane-packed tile heights: f32 8, bf16 16, int8/fp8 32.
    return {4: 8, 2: 16, 1: 32}.get(itemsize, 8)


def _factor_2d_small(n):
    """Small-input 2-D factorization with >= 8 rows where possible."""
    limit = max(1, min(n // 8, 512))
    for lane in range(limit, 1, -1):
        if n % lane == 0:
            return n // lane, lane
    return 1, n   # tiny or prime n: latency-dominated anyway


def _factor_2d_large(n, itemsize):
    """Lane-dense (rows, lane) factorization for the tiled path, or None."""
    min_rows = _min_rows(itemsize)
    # Preferred: lane a multiple of 128 (full native vreg lanes, unmasked vst).
    for lane in _LANE_CANDIDATES:
        if n % lane == 0 and n // lane >= min_rows:
            return n // lane, lane
    # Unaligned element count: any divisor in [128, 8192] as the last dim is
    # still reasonably lane-dense and needs NO padding / extra HBM copies
    # (the block's last dim equals the full array dim, which Pallas allows).
    for lane in range(min(n // 8, 8192), 127, -1):
        if n % lane == 0:
            return n // lane, lane
    return None


def _compute_tile_rows(rows, lane, itemsize):
    """Rows per block: ~8 MiB target, >=2 grid steps, native sublane tiling."""
    min_rows = _min_rows(itemsize)
    row_bytes = lane * itemsize
    tile = max(min_rows, _TARGET_BLOCK_BYTES // row_bytes)
    # Cap so the grid has at least 2 steps when the slab is splittable, so the
    # "parallel" axis can shard across both v7x TensorCores.
    if rows >= 2 * min_rows:
        tile = min(tile, -(-rows // 2))            # ceil(rows / 2)
    # Round to a multiple of 32 when possible (free for f32, keeps bf16/int8
    # packed layouts native), otherwise to the dtype-native minimum (8/16/32).
    if tile >= 32:
        tile = (tile // 32) * 32
    else:
        tile = max(min_rows, (tile // min_rows) * min_rows)
    return min(tile, rows)


def _single_block_call(x2d):
    """Whole-array single-block call for small inputs (no grid overhead)."""
    n = int(x2d.size)
    return pl.pallas_call(
        _lambda_kernel,
        out_shape=jax.ShapeDtypeStruct(x2d.shape, x2d.dtype),
        cost_estimate=_cost(n, x2d.dtype.itemsize),
    )(x2d)


def _tiled_call(x2d):
    """Tiled, pipelined call over a lane-dense (rows, lane) slab."""
    rows, lane = x2d.shape
    itemsize = x2d.dtype.itemsize
    tile_rows = _compute_tile_rows(rows, lane, itemsize)
    grid = (pl.cdiv(rows, tile_rows),)
    return pl.pallas_call(
        _lambda_kernel,
        out_shape=jax.ShapeDtypeStruct((rows, lane), x2d.dtype),
        grid_spec=pltpu.PrefetchScalarGridSpec(
            num_scalar_prefetch=0,
            grid=grid,
            in_specs=[pl.BlockSpec((tile_rows, lane), lambda i: (i, 0))],
            out_specs=pl.BlockSpec((tile_rows, lane), lambda i: (i, 0)),
        ),
        compiler_params=pltpu.CompilerParams(
            dimension_semantics=("parallel",),     # megacore sharding on v7x
            vmem_limit_bytes=_VMEM_LIMIT_BYTES,
        ),
        cost_estimate=_cost(rows * lane, itemsize),
    )(x2d)


def pallas_lam(x):
    """The concrete lambda passed to Lambda: elementwise x*2+1 via Pallas."""
    orig_shape = x.shape
    n = int(x.size)
    if n == 0:
        return x

    itemsize = x.dtype.itemsize
    nbytes = n * itemsize

    if nbytes <= _SINGLE_BLOCK_MAX_BYTES:
        # Small input: one block over the whole slab — no grid, no padding,
        # no extra HBM copies (contiguous reshapes are free).
        if n % 128 == 0:
            x2d = x.reshape(n // 128, 128)
        else:
            rows, lane = _factor_2d_small(n)
            x2d = x.reshape(rows, lane)
        return _single_block_call(x2d).reshape(orig_shape)

    # Large input: lane-dense tiled path.  Divisor-based factorization avoids
    # any padding even when n is not a multiple of 128 (Pallas masks the
    # partial last row-block).
    factored = _factor_2d_large(n, itemsize)
    if factored is None:
        # TODO(synk): pathological element count (no divisor >= 128): the
        # pad + slice below costs ~3x HBM traffic; a masked-tail manual-DMA
        # kernel would remove it.
        pad = (-n) % 128
        flat = jnp.concatenate([x.reshape(-1), jnp.zeros((pad,), x.dtype)])
        rows, lane = _factor_2d_large(n + pad, itemsize)
        y = _tiled_call(flat.reshape(rows, lane)).reshape(-1)[:n]
        return y.reshape(orig_shape)

    rows, lane = factored
    return _tiled_call(x.reshape(rows, lane)).reshape(orig_shape)


class Lambda:
    """JAX/Pallas equivalent of torch_redstone.Lambda: forward(x) = lam(x)."""

    def __init__(self, lam):
        self.lam = lam

    def __call__(self, inputs):
        return self.lam(inputs)


if __name__ == "__main__":
    key = jax.random.PRNGKey(0)
    # NCHW input matching the PyTorch convention: batch=2, channels=4, 16x16.
    x = jax.random.normal(key, (2, 4, 16, 16), dtype=jnp.float32)

    module = Lambda(pallas_lam)

    # Small-input aligned path (single block, no grid).
    y = jax.block_until_ready(module(x))
    ref = x * 2.0 + 1.0
    assert y.shape == x.shape and y.dtype == x.dtype
    assert jnp.allclose(y, ref, atol=1e-6, rtol=1e-6)

    # Small unaligned path: divisor factorization, no padding.
    x_odd = jax.random.normal(jax.random.PRNGKey(1), (3, 5, 7, 11),
                              dtype=jnp.float32)
    y_odd = jax.block_until_ready(module(x_odd))
    assert jnp.allclose(y_odd, x_odd * 2.0 + 1.0, atol=1e-6, rtol=1e-6)

    # Integer dtype: kernel constants are weakly typed, no float promotion.
    x_int = jnp.arange(2048, dtype=jnp.int32).reshape(2, 4, 16, 16)
    y_int = jax.block_until_ready(module(x_int))
    assert y_int.dtype == jnp.int32
    assert jnp.array_equal(y_int, x_int * 2 + 1)

    # Large tiled path (4 MiB tensor -> >= 2 grid steps for v7x megacore).
    x_big = jax.random.normal(jax.random.PRNGKey(0), (4, 8, 128, 256),
                              dtype=jnp.float32)
    y_big = jax.block_until_ready(module(x_big))
    assert jnp.allclose(y_big, x_big * 2.0 + 1.0, atol=1e-6, rtol=1e-6)

    print("KERNEL_OK")
</pallas_src>

<mosaic_0001>
module attributes {stable_mosaic.version = 11 : i64} {
  func.func @_lambda_kernel(%arg0: memref<16x128xf32, #tpu.memory_space<vmem>>, %arg1: memref<16x128xf32, #tpu.memory_space<vmem>>) attributes {dimension_semantics = [], scalar_prefetch = 0 : i64, scratch_operands = 0 : i64, tpu.core_type = #tpu.core_type<tc>} {
    %c0 = arith.constant 0 : index
    %c0_0 = arith.constant 0 : index
    %0 = vector.load %arg0[%c0, %c0_0] : memref<16x128xf32, #tpu.memory_space<vmem>>, vector<16x128xf32>
    %cst = arith.constant 2.000000e+00 : f32
    %1 = vector.broadcast %cst : f32 to vector<16x128xf32>
    %2 = arith.mulf %0, %1 : vector<16x128xf32>
    %cst_1 = arith.constant 1.000000e+00 : f32
    %3 = vector.broadcast %cst_1 : f32 to vector<16x128xf32>
    %4 = arith.addf %2, %3 : vector<16x128xf32>
    %c0_2 = arith.constant 0 : index
    %c0_3 = arith.constant 0 : index
    %5 = vector.load %arg1[%c0_2, %c0_3] : memref<16x128xf32, #tpu.memory_space<vmem>>, vector<16x128xf32>
    tpu.vector_store %arg1[%c0_2, %c0_3], %4 {strides = array<i32>} : memref<16x128xf32, #tpu.memory_space<vmem>>, vector<16x128xf32>,
    return
  }
}

</mosaic_0001>

<bundles_post_ra>
// kernel: tpu_custom_call.1
= control target key start
LH: loop header
LB: loop body
LE: loop exit
PB: predicated region body
PF: predicated region fallthrough
CT: control target
= control target key end

     0   :  { %6 = vsyncpa [#allocation3], 0  ;;  %s116_s0 = inlined_call_operand.hbm [shape: f32[16,128], index: 0, kind: input, shape index: {}]   ;;  %s117_s1 = inlined_call_operand.hbm [shape: f32[16,128], index: 1, kind: output, shape index: {}]  }
   0x1   :  { %7 = vsyncpa [#allocation4], 0  ;;  %s96_s6 = smov [#allocation2]  }
   0x2   :  { %s13_s7 = sshll.u32 %s96_s6, 4  ;;  %s14_s7 = int_to_ptr.vmem [resolvable:$true] %s13_s7 }
   0x3   :  { %s60_s8 = scalar_lea.vmem %s14_s7, 256  ;;  %p65_p1 = scmp.lt.s32.totalorder %s14_s7, %s14_s7 }
   0x4   :  { %p61_p0 = scmp.ne.s32.totalorder %s14_s7, %s60_s8  ;;  %p66_p2 = scmp.lt.s32.totalorder %s60_s8, %s60_s8 }
   0x6   :  { %p67_p3 = por %p66_p2, %p65_p1 }
   0x8   :  { %p68_p4 = pnand %p67_p3, %p61_p0 }
   0xa   :  { %71 = shalt.err (!%p68_p4)
}
   0xb   :  { %s97_s9 = smov 128   ;;  %s98_s10 = smov 8  }
   0xc   :  { %19 = dma.hbm_to_vmem [thread:$0]  %s116_s0, 256, %s14_s7, [#allocation3], %s97_s9, %s97_s9, %s98_s10  }
   0xd   :  { %92 = dma.done.wait [#allocation3], 256  }
   0xe   :  { %93 = vsyncadd [#allocation3], 4294967040  ;;  %v23_v0 = vld [vmem:[#allocation2] sm:$0xff]  ;;  %v24_v1 = vld [vmem:[#allocation2 + $0x8] sm:$0xff]  ;;  %s99_s13 = smov [#allocation5]  }
   0xf   :  { %s36_s14 = sshll.u32 %s99_s13, 4  ;;  %v25_v2 = vmul.f32 2.0, %v23_v0  ;;  %v26_v3 = vmul.f32 2.0, %v24_v1  ;;  %s37_s14 = int_to_ptr.vmem [resolvable:$true] %s36_s14 }
  0x10   :  { %s72_s15 = scalar_lea.vmem %s37_s14, 256  ;;  %p77_p6 = scmp.lt.s32.totalorder %s37_s14, %s37_s14 }
  0x11   :  { %v27_v4 = vadd.f32 1.0, %v25_v2  ;;  %v28_v5 = vadd.f32 1.0, %v26_v3  ;;  %p73_p5 = scmp.ne.s32.totalorder %s37_s14, %s72_s15  ;;  %p78_p7 = scmp.lt.s32.totalorder %s72_s15, %s72_s15 }
  0x13   :  { %29 = vst [vmem:[#allocation5] sm:$0xff] %v27_v4  ;;  %30 = vst [vmem:[#allocation5 + $0x8] sm:$0xff] %v28_v5  ;;  %p79_p8 = por %p78_p7, %p77_p6 }
  0x15   :  { %p80_p9 = pnand %p79_p8, %p73_p5 }
  0x17   :  { %83 = shalt.err (!%p80_p9)
}
  0x18   :  { %42 = dma.vmem_to_hbm [thread:$0]  %s37_s14, 256, %s117_s1, [#allocation4], %s97_s9, %s97_s9, %s98_s10  }
  0x19   :  { %94 = dma.done.wait [#allocation4], 256  }
  0x1a   :  { %95 = vsyncadd [#allocation4], 4294967040 }
  0x1b   :  { %46 = vsyncpa [#allocation3], 1 }
  0x1c   :  { %47 = vsyncpa [#allocation4], 1 }

</bundles_post_ra>
